<compile_context>
chip_gen: v5e
topology: v5e:2x2
jax: 0.10.0
libtpu: 0.0.40
codegen_flags: <defaults>
</compile_context>

<pallas_src>
import functools

import jax
import jax.numpy as jnp
from jax.experimental import pallas as pl
from jax.experimental.pallas import tpu as pltpu

IN_DIM = 200 * 4          # 800
H1, H2, H3 = 100, 200, 100
OUT_DIM = 200 * 2         # 400

# Hidden dims zero-padded to lane multiples (100->128, 200->256, 100->128).
H1P, H2P, H3P = 128, 256, 128


def _round_up(n, m):
    return ((n + m - 1) // m) * m


def mlp_kernel(x_ref, w1_ref, b1_ref, w2_ref, b2_ref, w3_ref, b3_ref,
               w4_ref, b4_ref, o_ref):
    # x arrives f32 from HBM; cast to bf16 here so the wrapper never materializes
    # a bf16 copy of x in HBM.
    h = x_ref[...].astype(jnp.bfloat16)

    h = jnp.dot(h, w1_ref[...], preferred_element_type=jnp.float32)
    h = jnp.maximum(h + b1_ref[...], 0.0).astype(jnp.bfloat16)

    h = jnp.dot(h, w2_ref[...], preferred_element_type=jnp.float32)
    h = jnp.maximum(h + b2_ref[...], 0.0).astype(jnp.bfloat16)

    h = jnp.dot(h, w3_ref[...], preferred_element_type=jnp.float32)
    h = jnp.maximum(h + b3_ref[...], 0.0).astype(jnp.bfloat16)

    h = jnp.dot(h, w4_ref[...], preferred_element_type=jnp.float32)
    o_ref[...] = (h + b4_ref[...]).astype(o_ref.dtype)   # no ReLU after fc4


def prep_params(params):
    """Pad feature dims to lane multiples; weights -> bf16, biases -> (1, N) f32.

    Call ONCE and reuse the result (avoids re-padding / re-casting ~0.6 MiB of
    weights on every forward call).
    """
    (w1, b1), (w2, b2), (w3, b3), (w4, b4) = params

    def pad_w(w, rows, cols):
        r, c = w.shape
        return jnp.pad(w, ((0, rows - r), (0, cols - c))).astype(jnp.bfloat16)

    def pad_b(b, cols):
        return jnp.pad(b, (0, cols - b.shape[0])).reshape(1, cols).astype(jnp.float32)

    return (pad_w(w1, IN_DIM, H1P), pad_b(b1, H1P),
            pad_w(w2, H1P, H2P),    pad_b(b2, H2P),
            pad_w(w3, H2P, H3P),    pad_b(b3, H3P),
            pad_w(w4, H3P, OUT_DIM), pad_b(b4, OUT_DIM))


def _pick_tile(B, block_b):
    """Batch tile: big (amortize per-step overhead), multiple of 8 sublanes."""
    tb = min(block_b, _round_up(B, 8))
    # For mid-size batches, split into (at least) two grid steps so the
    # "parallel" batch axis can shard across both TensorCores on v7x.
    # Tiles stay >= 256 rows, so per-step overhead remains amortized on v5e/v6e.
    if pl.cdiv(B, tb) == 1 and B >= 512:
        tb = _round_up(pl.cdiv(B, 2), 8)
    return tb


@functools.partial(jax.jit, static_argnames=("block_b",))
def mlp_forward(x, prepped_params, *, block_b=1024):
    """x: any shape flattening to (-1, 800), f32. Returns (B, 200, 2) float32."""
    w1, b1, w2, b2, w3, b3, w4, b4 = prepped_params
    x2d = x.reshape(-1, IN_DIM)                 # free reshape, stays f32
    B = x2d.shape[0]
    tb = _pick_tile(B, block_b)
    grid = (pl.cdiv(B, tb),)

    def const(shape):
        # Same block every grid step => weights/biases stay resident in VMEM.
        return pl.BlockSpec(shape, lambda i: (0, 0))

    flops = 2 * B * (IN_DIM * H1P + H1P * H2P + H2P * H3P + H3P * OUT_DIM)
    bytes_accessed = (
        x2d.size * x2d.dtype.itemsize + B * OUT_DIM * 4 +
        sum(int(a.size) * a.dtype.itemsize
            for a in (w1, b1, w2, b2, w3, b3, w4, b4)))

    out = pl.pallas_call(
        mlp_kernel,
        out_shape=jax.ShapeDtypeStruct((B, OUT_DIM), jnp.float32),
        grid=grid,
        in_specs=[
            pl.BlockSpec((tb, IN_DIM), lambda i: (i, 0)),   # x: batch-tiled, f32
            const((IN_DIM, H1P)),   const((1, H1P)),
            const((H1P, H2P)),      const((1, H2P)),
            const((H2P, H3P)),      const((1, H3P)),
            const((H3P, OUT_DIM)),  const((1, OUT_DIM)),
        ],
        out_specs=pl.BlockSpec((tb, OUT_DIM), lambda i: (i, 0)),
        compiler_params=pltpu.CompilerParams(
            dimension_semantics=("parallel",),
            vmem_limit_bytes=40 * 1024 * 1024),
        cost_estimate=pl.CostEstimate(
            flops=flops, transcendentals=0, bytes_accessed=bytes_accessed),
    )(x2d, w1, b1, w2, b2, w3, b3, w4, b4)

    return out.reshape(-1, 200, 2)


def init_params(key):
    """Deterministic init matching nn.Linear shapes (stored transposed: [in, out])."""
    def linear(k, fan_in, fan_out):
        kw, kb = jax.random.split(k)
        bound = 1.0 / jnp.sqrt(fan_in)
        w = jax.random.uniform(kw, (fan_in, fan_out), jnp.float32, -bound, bound)
        b = jax.random.uniform(kb, (fan_out,), jnp.float32, -bound, bound)
        return w, b

    k1, k2, k3, k4 = jax.random.split(key, 4)
    return (
        linear(k1, IN_DIM, H1),
        linear(k2, H1, H2),
        linear(k3, H2, H3),
        linear(k4, H3, OUT_DIM),
    )


def mlp_reference(x, params):
    """Reference with the same bf16-operand / f32-accumulate numerics as the kernel."""
    (w1, b1), (w2, b2), (w3, b3), (w4, b4) = params

    def lin(h, w, b):
        return jnp.dot(h, w.astype(jnp.bfloat16),
                       preferred_element_type=jnp.float32) + b

    h = x.reshape(-1, IN_DIM).astype(jnp.bfloat16)
    h = jnp.maximum(lin(h, w1, b1), 0.0).astype(jnp.bfloat16)
    h = jnp.maximum(lin(h, w2, b2), 0.0).astype(jnp.bfloat16)
    h = jnp.maximum(lin(h, w3, b3), 0.0).astype(jnp.bfloat16)
    h = lin(h, w4, b4)
    return h.reshape(-1, 200, 2)


if __name__ == "__main__":
    key = jax.random.PRNGKey(0)
    kx, kp = jax.random.split(key)
    params = init_params(kp)
    prepped = prep_params(params)           # pad/cast weights ONCE

    # Small batch; input shaped (B, 200, 4) to exercise the x.view(-1, 800).
    x = jax.random.normal(kx, (2, 200, 4), jnp.float32)
    out = jax.block_until_ready(mlp_forward(x, prepped))
    ref = mlp_reference(x, params)
    assert out.shape == (2, 200, 2), out.shape
    assert jnp.allclose(out, ref, atol=1e-2, rtol=1e-2), \
        float(jnp.max(jnp.abs(out - ref)))

    # Mid-size batch: exercises the 2-step split (both TCs on v7x) + partial tile.
    x2 = jax.random.normal(kx, (600, 200, 4), jnp.float32)
    out2 = jax.block_until_ready(mlp_forward(x2, prepped))
    ref2 = mlp_reference(x2, params)
    assert out2.shape == (600, 200, 2), out2.shape
    assert jnp.allclose(out2, ref2, atol=1e-2, rtol=1e-2), \
        float(jnp.max(jnp.abs(out2 - ref2)))

    # Small explicit tile: forces several grid steps through the pipeline.
    out3 = jax.block_until_ready(mlp_forward(x2, prepped, block_b=128))
    assert jnp.allclose(out3, ref2, atol=1e-2, rtol=1e-2), \
        float(jnp.max(jnp.abs(out3 - ref2)))

    print("KERNEL_OK")
</pallas_src>

<mosaic_0001>
module attributes {stable_mosaic.version = 11 : i64} {
  func.func @mlp_kernel(%arg0: i32, %arg1: memref<8x800xf32, #tpu.memory_space<vmem>>, %arg2: memref<800x128xbf16, #tpu.memory_space<vmem>>, %arg3: memref<1x128xf32, #tpu.memory_space<vmem>>, %arg4: memref<128x256xbf16, #tpu.memory_space<vmem>>, %arg5: memref<1x256xf32, #tpu.memory_space<vmem>>, %arg6: memref<256x128xbf16, #tpu.memory_space<vmem>>, %arg7: memref<1x128xf32, #tpu.memory_space<vmem>>, %arg8: memref<128x400xbf16, #tpu.memory_space<vmem>>, %arg9: memref<1x400xf32, #tpu.memory_space<vmem>>, %arg10: memref<8x400xf32, #tpu.memory_space<vmem>>) attributes {dimension_semantics = [#tpu.dimension_semantics<parallel>], iteration_bounds = array<i64: 1>, scalar_prefetch = 0 : i64, scratch_operands = 0 : i64, tpu.core_type = #tpu.core_type<tc>, window_params = [{transform_indices = @transform_0, window_bounds = array<i64: 8, 800>}, {pipeline_mode = #tpu.pipeline_mode<synchronous>, transform_indices = @transform_1, window_bounds = array<i64: 800, 128>}, {pipeline_mode = #tpu.pipeline_mode<synchronous>, transform_indices = @transform_2, window_bounds = array<i64: 1, 128>}, {pipeline_mode = #tpu.pipeline_mode<synchronous>, transform_indices = @transform_3, window_bounds = array<i64: 128, 256>}, {pipeline_mode = #tpu.pipeline_mode<synchronous>, transform_indices = @transform_4, window_bounds = array<i64: 1, 256>}, {pipeline_mode = #tpu.pipeline_mode<synchronous>, transform_indices = @transform_5, window_bounds = array<i64: 256, 128>}, {pipeline_mode = #tpu.pipeline_mode<synchronous>, transform_indices = @transform_6, window_bounds = array<i64: 1, 128>}, {pipeline_mode = #tpu.pipeline_mode<synchronous>, transform_indices = @transform_7, window_bounds = array<i64: 128, 400>}, {pipeline_mode = #tpu.pipeline_mode<synchronous>, transform_indices = @transform_8, window_bounds = array<i64: 1, 400>}, {transform_indices = @transform_9, window_bounds = array<i64: 8, 400>}]} {
    %c0 = arith.constant 0 : index
    %c0_0 = arith.constant 0 : index
    %0 = vector.load %arg1[%c0, %c0_0] : memref<8x800xf32, #tpu.memory_space<vmem>>, vector<8x800xf32>
    %1 = arith.truncf %0 : vector<8x800xf32> to vector<8x800xbf16>
    %c0_1 = arith.constant 0 : index
    %c0_2 = arith.constant 0 : index
    %2 = vector.load %arg2[%c0_1, %c0_2] : memref<800x128xbf16, #tpu.memory_space<vmem>>, vector<800x128xbf16>
    %cst = arith.constant dense<0.000000e+00> : vector<8x128xf32>
    %3 = tpu.matmul %1, %2, %cst {dimension_numbers = #tpu.dot_dimension_numbers<[1], [0], [0], [1], [0, 0, 1, 1], [], []>} : vector<8x800xbf16>, vector<800x128xbf16>, vector<8x128xf32> -> vector<8x128xf32>
    %c0_3 = arith.constant 0 : index
    %c0_4 = arith.constant 0 : index
    %4 = vector.load %arg3[%c0_3, %c0_4] : memref<1x128xf32, #tpu.memory_space<vmem>>, vector<1x128xf32>
    %5 = vector.broadcast %4 : vector<1x128xf32> to vector<8x128xf32>
    %6 = arith.addf %3, %5 : vector<8x128xf32>
    %cst_5 = arith.constant 0.000000e+00 : f32
    %7 = vector.broadcast %cst_5 : f32 to vector<8x128xf32>
    %8 = arith.maximumf %6, %7 : vector<8x128xf32>
    %9 = arith.truncf %8 : vector<8x128xf32> to vector<8x128xbf16>
    %c0_6 = arith.constant 0 : index
    %c0_7 = arith.constant 0 : index
    %10 = vector.load %arg4[%c0_6, %c0_7] : memref<128x256xbf16, #tpu.memory_space<vmem>>, vector<128x256xbf16>
    %cst_8 = arith.constant dense<0.000000e+00> : vector<8x256xf32>
    %11 = tpu.matmul %9, %10, %cst_8 {dimension_numbers = #tpu.dot_dimension_numbers<[1], [0], [0], [1], [0, 0, 1, 1], [], []>} : vector<8x128xbf16>, vector<128x256xbf16>, vector<8x256xf32> -> vector<8x256xf32>
    %c0_9 = arith.constant 0 : index
    %c0_10 = arith.constant 0 : index
    %12 = vector.load %arg5[%c0_9, %c0_10] : memref<1x256xf32, #tpu.memory_space<vmem>>, vector<1x256xf32>
    %13 = vector.broadcast %12 : vector<1x256xf32> to vector<8x256xf32>
    %14 = arith.addf %11, %13 : vector<8x256xf32>
    %cst_11 = arith.constant 0.000000e+00 : f32
    %15 = vector.broadcast %cst_11 : f32 to vector<8x256xf32>
    %16 = arith.maximumf %14, %15 : vector<8x256xf32>
    %17 = arith.truncf %16 : vector<8x256xf32> to vector<8x256xbf16>
    %c0_12 = arith.constant 0 : index
    %c0_13 = arith.constant 0 : index
    %18 = vector.load %arg6[%c0_12, %c0_13] : memref<256x128xbf16, #tpu.memory_space<vmem>>, vector<256x128xbf16>
    %cst_14 = arith.constant dense<0.000000e+00> : vector<8x128xf32>
    %19 = tpu.matmul %17, %18, %cst_14 {dimension_numbers = #tpu.dot_dimension_numbers<[1], [0], [0], [1], [0, 0, 1, 1], [], []>} : vector<8x256xbf16>, vector<256x128xbf16>, vector<8x128xf32> -> vector<8x128xf32>
    %c0_15 = arith.constant 0 : index
    %c0_16 = arith.constant 0 : index
    %20 = vector.load %arg7[%c0_15, %c0_16] : memref<1x128xf32, #tpu.memory_space<vmem>>, vector<1x128xf32>
    %21 = vector.broadcast %20 : vector<1x128xf32> to vector<8x128xf32>
    %22 = arith.addf %19, %21 : vector<8x128xf32>
    %cst_17 = arith.constant 0.000000e+00 : f32
    %23 = vector.broadcast %cst_17 : f32 to vector<8x128xf32>
    %24 = arith.maximumf %22, %23 : vector<8x128xf32>
    %25 = arith.truncf %24 : vector<8x128xf32> to vector<8x128xbf16>
    %c0_18 = arith.constant 0 : index
    %c0_19 = arith.constant 0 : index
    %26 = vector.load %arg8[%c0_18, %c0_19] : memref<128x400xbf16, #tpu.memory_space<vmem>>, vector<128x400xbf16>
    %cst_20 = arith.constant dense<0.000000e+00> : vector<8x400xf32>
    %27 = tpu.matmul %25, %26, %cst_20 {dimension_numbers = #tpu.dot_dimension_numbers<[1], [0], [0], [1], [0, 0, 1, 1], [], []>} : vector<8x128xbf16>, vector<128x400xbf16>, vector<8x400xf32> -> vector<8x400xf32>
    %c0_21 = arith.constant 0 : index
    %c0_22 = arith.constant 0 : index
    %28 = vector.load %arg9[%c0_21, %c0_22] : memref<1x400xf32, #tpu.memory_space<vmem>>, vector<1x400xf32>
    %29 = vector.broadcast %28 : vector<1x400xf32> to vector<8x400xf32>
    %30 = arith.addf %27, %29 : vector<8x400xf32>
    %c0_23 = arith.constant 0 : index
    %c0_24 = arith.constant 0 : index
    %31 = vector.load %arg10[%c0_23, %c0_24] : memref<8x400xf32, #tpu.memory_space<vmem>>, vector<8x400xf32>
    tpu.vector_store %arg10[%c0_23, %c0_24], %30 {strides = array<i32>} : memref<8x400xf32, #tpu.memory_space<vmem>>, vector<8x400xf32>,
    return
  }
  func.func @transform_0(%arg0: i32) -> (i32, i32) {
    %c0_i32 = arith.constant 0 : i32
    %c0_i32_0 = arith.constant 0 : i32
    return %arg0, %c0_i32 : i32, i32
  }
  func.func @transform_1(%arg0: i32) -> (i32, i32) {
    %c0_i32 = arith.constant 0 : i32
    %c0_i32_0 = arith.constant 0 : i32
    %c0_i32_1 = arith.constant 0 : i32
    return %c0_i32, %c0_i32_0 : i32, i32
  }
  func.func @transform_2(%arg0: i32) -> (i32, i32) {
    %c0_i32 = arith.constant 0 : i32
    %c0_i32_0 = arith.constant 0 : i32
    %c0_i32_1 = arith.constant 0 : i32
    return %c0_i32, %c0_i32_0 : i32, i32
  }
  func.func @transform_3(%arg0: i32) -> (i32, i32) {
    %c0_i32 = arith.constant 0 : i32
    %c0_i32_0 = arith.constant 0 : i32
    %c0_i32_1 = arith.constant 0 : i32
    return %c0_i32, %c0_i32_0 : i32, i32
  }
  func.func @transform_4(%arg0: i32) -> (i32, i32) {
    %c0_i32 = arith.constant 0 : i32
    %c0_i32_0 = arith.constant 0 : i32
    %c0_i32_1 = arith.constant 0 : i32
    return %c0_i32, %c0_i32_0 : i32, i32
  }
  func.func @transform_5(%arg0: i32) -> (i32, i32) {
    %c0_i32 = arith.constant 0 : i32
    %c0_i32_0 = arith.constant 0 : i32
    %c0_i32_1 = arith.constant 0 : i32
    return %c0_i32, %c0_i32_0 : i32, i32
  }
  func.func @transform_6(%arg0: i32) -> (i32, i32) {
    %c0_i32 = arith.constant 0 : i32
    %c0_i32_0 = arith.constant 0 : i32
    %c0_i32_1 = arith.constant 0 : i32
    return %c0_i32, %c0_i32_0 : i32, i32
  }
  func.func @transform_7(%arg0: i32) -> (i32, i32) {
    %c0_i32 = arith.constant 0 : i32
    %c0_i32_0 = arith.constant 0 : i32
    %c0_i32_1 = arith.constant 0 : i32
    return %c0_i32, %c0_i32_0 : i32, i32
  }
  func.func @transform_8(%arg0: i32) -> (i32, i32) {
    %c0_i32 = arith.constant 0 : i32
    %c0_i32_0 = arith.constant 0 : i32
    %c0_i32_1 = arith.constant 0 : i32
    return %c0_i32, %c0_i32_0 : i32, i32
  }
  func.func @transform_9(%arg0: i32) -> (i32, i32) {
    %c0_i32 = arith.constant 0 : i32
    %c0_i32_0 = arith.constant 0 : i32
    return %arg0, %c0_i32 : i32, i32
  }
}

</mosaic_0001>

<bundles_post_ra>
// kernel: mlp_forward.1
= control target key start
LH: loop header
LB: loop body
LE: loop exit
PB: predicated region body
PF: predicated region fallthrough
CT: control target
= control target key end

     0   :  { %vm489_vm0 = vcmask 261120   ;;  %vm1139_vm1 = vcmask 1041408   ;;  %vm1145_vm2 = vcmask 1043458   ;;  %vm1141_vm4 = vcmask 1045508   ;;  %s2363_s0 = inlined_call_operand.vmem [shape: f32[2,800], index: 0, kind: input, shape index: {}]   ;;  %s2364_s1 = inlined_call_operand.vmem [shape: bf16[800,128], index: 1, kind: input, shape index: {}]   ;;  %s2365_s2 = inlined_call_operand.vmem [shape: f32[1,128], index: 2, kind: input, shape index: {}]   ;;  %s2366_s3 = inlined_call_operand.vmem [shape: bf16[128,256], index: 3, kind: input, shape index: {}]   ;;  %s2367_s4 = inlined_call_operand.vmem [shape: f32[1,256], index: 4, kind: input, shape index: {}]   ;;  %s2368_s5 = inlined_call_operand.vmem [shape: bf16[256,128], index: 5, kind: input, shape index: {}]   ;;  %s2369_s6 = inlined_call_operand.vmem [shape: f32[1,128], index: 6, kind: input, shape index: {}]   ;;  %s2370_s7 = inlined_call_operand.vmem [shape: bf16[128,400], index: 7, kind: input, shape index: {}]   ;;  %s2371_s8 = inlined_call_operand.vmem [shape: f32[1,400], index: 8, kind: input, shape index: {}]   ;;  %s2372_s9 = inlined_call_operand.vmem [shape: f32[2,400], index: 9, kind: output, shape index: {}]  }
   0x1   :  { %v1677_v0 = vld [vmem:[%s2364_s1 + $0x38] sm:$0xff]  ;;  %v1676_v3 = vld [vmem:[%s2364_s1 + $0x30] sm:$0xff]  ;;  %v1675_v8 = vld [vmem:[%s2364_s1 + $0x28] sm:$0xff]  ;;  %vm1166_vm6 = vcmask 130054   ;;  %vm1143_vm7 = vcmask 1043456  }
   0x2   :  { %v1685_v1 = vld [vmem:[%s2364_s1 + $0x78] sm:$0xff]  ;;  %493 = vmatpush.bf16.msra.mxu0 %v1677_v0  ;;  %v1684_v4 = vld [vmem:[%s2364_s1 + $0x70] sm:$0xff]  ;;  %v1683_v9 = vld [vmem:[%s2364_s1 + $0x68] sm:$0xff] }
   0x3   :  { %v1693_v2 = vld [vmem:[%s2364_s1 + $0xb8] sm:$0xff]  ;;  %506 = vmatpush.bf16.msra.mxu1 %v1685_v1  ;;  %v1692_v5 = vld [vmem:[%s2364_s1 + $0xb0] sm:$0xff]  ;;  %v1691_v10 = vld [vmem:[%s2364_s1 + $0xa8] sm:$0xff] }
   0x4   :  { %519 = vmatpush.bf16.msra.mxu2 %v1693_v2  ;;  %v1701_v6 = vld [vmem:[%s2364_s1 + $0xf8] sm:$0xff]  ;;  %v1700_v7 = vld [vmem:[%s2364_s1 + $0xf0] sm:$0xff]  ;;  %v1699_v11 = vld [vmem:[%s2364_s1 + $0xe8] sm:$0xff] }
   0x5   :  { %532 = vmatpush.bf16.msra.mxu3 %v1701_v6  ;;  %v1674_v12 = vld [vmem:[%s2364_s1 + $0x20] sm:$0xff]  ;;  %v35_v16 = vld [vmem:[%s2363_s0 + $0xe] sm:$0xff]  ;;  %v1673_v20 = vld [vmem:[%s2364_s1 + $0x18] sm:$0xff] }
   0x6   :  { %494 = vmatpush.bf16.msra.mxu0 %v1676_v3  ;;  %v1682_v13 = vld [vmem:[%s2364_s1 + $0x60] sm:$0xff]  ;;  %v39_v18 = vld [vmem:[%s2363_s0 + $0x2a] sm:$0xff]  ;;  %51 = vst [vmem:[#allocation1 + $0x1] ss:$4 sm:$0xff] %v35_v16  ;;  %v1681_v21 = vld [vmem:[%s2364_s1 + $0x58] sm:$0xff] }
   0x7   :  { %507 = vmatpush.bf16.msra.mxu1 %v1684_v4  ;;  %v1690_v14 = vld [vmem:[%s2364_s1 + $0xa0] sm:$0xff]  ;;  %v1689_v22 = vld [vmem:[%s2364_s1 + $0x98] sm:$0xff]  ;;  %55 = vst [vmem:[#allocation1 + $0x3] ss:$4 sm:$0xff] %v39_v18  ;;  %v1672_v23 = vld [vmem:[%s2364_s1 + $0x10] sm:$0xff] }
   0x8   :  { %520 = vmatpush.bf16.msra.mxu2 %v1692_v5  ;;  %v33_v15 = vld [vmem:[%s2363_s0] sm:$0xff]  ;;  %v1680_v24 = vld [vmem:[%s2364_s1 + $0x50] sm:$0xff]  ;;  %v34_v25 = vld [vmem:[%s2363_s0 + $0x8] sm:$0x3f] }
   0x9   :  { %533 = vmatpush.bf16.msra.mxu3 %v1700_v7  ;;  %v37_v17 = vld [vmem:[%s2363_s0 + $0x1c] sm:$0xff]  ;;  %49 = vst [vmem:[#allocation1] ss:$4 sm:$0xff] %v33_v15  ;;  %v36_v26 = vld [vmem:[%s2363_s0 + $0x16] sm:$0x3f]  ;;  %v1671_v32 = vld [vmem:[%s2364_s1 + $0x8] sm:$0xff] }
   0xa   :  { %495 = vmatpush.bf16.msra.mxu0 %v1675_v8  ;;  %v1698_v19 = vld [vmem:[%s2364_s1 + $0xe0] sm:$0xff]  ;;  %53 = vst [vmem:[#allocation1 + $0x2] ss:$4 sm:$0xff] %v37_v17  ;;  %v1697_v27 = vld [vmem:[%s2364_s1 + $0xd8] sm:$0xff]  ;;  %v40_v29 = vld [vmem:[%s2363_s0 + $0x32] sm:$0x3f] }
   0xb   :  { %508 = vmatpush.bf16.msra.mxu1 %v1683_v9  ;;  %v38_v28 = vld [vmem:[%s2363_s0 + $0x24] sm:$0x3f]  ;;  %57 = vst [vmem:[#allocation1 + $0x20] ss:$4 sm:$0xff] %v34_v25  ;;  %v1688_v30 = vld [vmem:[%s2364_s1 + $0x90] sm:$0xff]  ;;  %v1709_v40 = vld [vmem:[%s2364_s1 + $0x138] sm:$0xff] }
   0xc   :  { %521 = vmatpush.bf16.msra.mxu2 %v1691_v10  ;;  %59 = vst [vmem:[#allocation1 + $0x21] ss:$4 sm:$0xff] %v36_v26  ;;  %v1696_v31 = vld [vmem:[%s2364_s1 + $0xd0] sm:$0xff]  ;;  %v1679_v33 = vld [vmem:[%s2364_s1 + $0x48] sm:$0xff]  ;;  %v1670_v35 = vld [vmem:[%s2364_s1] sm:$0xff] }
   0xd   :  { %534 = vmatpush.bf16.msra.mxu3 %v1699_v11  ;;  %61 = vst [vmem:[#allocation1 + $0x22] ss:$4 sm:$0xff] %v38_v28  ;;  %v1687_v34 = vld [vmem:[%s2364_s1 + $0x88] sm:$0xff]  ;;  %v1678_v36 = vld [vmem:[%s2364_s1 + $0x40] sm:$0xff]  ;;  %v1717_v41 = vld [vmem:[%s2364_s1 + $0x178] sm:$0xff] }
   0xe   :  { %496 = vmatpush.bf16.msra.mxu0 %v1674_v12  ;;  %63 = vst [vmem:[#allocation1 + $0x23] ss:$4 sm:$0xff] %v40_v29  ;;  %v1695_v37 = vld [vmem:[%s2364_s1 + $0xc8] sm:$0xff]  ;;  %v1686_v42 = vld [vmem:[%s2364_s1 + $0x80] sm:$0xff]  ;;  %v1708_v49 = vld [vmem:[%s2364_s1 + $0x130] sm:$0xff] }
   0xf   :  { %509 = vmatpush.bf16.msra.mxu1 %v1682_v13  ;;  %v1694_v46 = vld [vmem:[%s2364_s1 + $0xc0] sm:$0xff]  ;;  %v1719_v47 = vld [vmem:[%s2364_s1 + $0x188] sm:$0xff]  ;;  %v1716_v50 = vld [vmem:[%s2364_s1 + $0x170] sm:$0xff] }
  0x10   :  { %522 = vmatpush.bf16.msra.mxu2 %v1690_v14  ;;  %v1718_v53 = vld [vmem:[%s2364_s1 + $0x180] sm:$0xff]  ;;  %v1707_v54 = vld [vmem:[%s2364_s1 + $0x128] sm:$0xff]  ;;  %v1705_v58 = vld [vmem:[%s2364_s1 + $0x118] sm:$0xff] }
  0x11   :  { %535 = vmatpush.bf16.msra.mxu3 %v1698_v19  ;;  %v64_v38 = vld.sshfl [vmem:[#allocation1] sm:$0xff pattern:$0x73625140]  ;;  %v65_v39 = vld.sshfl [vmem:[#allocation1 + $0x8] sm:$0xff pattern:$0x73625140]  ;;  %vm1164_vm3 = vmor %vm1145_vm2, %vm1139_vm1 }
  0x12   :  { %497 = vmatpush.bf16.msra.mxu0 %v1673_v20  ;;  %v66_v43 = vld.sshfl [vmem:[#allocation1 + $0x10] sm:$0xff pattern:$0x73625140]  ;;  %v78_v44 = vpack.c.bf16 %v64_v38, %v64_v38  ;;  %v79_v45 = vpack.c.bf16 %v65_v39, %v65_v39  ;;  %v67_v48 = vld.sshfl [vmem:[#allocation1 + $0x18] sm:$0xff pattern:$0x73625140]  ;;  %vm1165_vm5 = vmor %vm1141_vm4, %vm1164_vm3 }
  0x13   :  { %510 = vmatpush.bf16.msra.mxu1 %v1681_v21  ;;  %v80_v51 = vpack.c.bf16 %v66_v43, %v66_v43  ;;  %v81_v52 = vpack.c.bf16 %v67_v48, %v67_v48  ;;  %v1715_v55 = vld [vmem:[%s2364_s1 + $0x168] sm:$0xff]  ;;  %v1706_v56 = vld [vmem:[%s2364_s1 + $0x120] sm:$0xff]  ;;  %v1713_v59 = vld [vmem:[%s2364_s1 + $0x158] sm:$0xff] }
  0x14   :  { %523 = vmatpush.bf16.msra.mxu2 %v1689_v22  ;;  %v1714_v57 = vld [vmem:[%s2364_s1 + $0x160] sm:$0xff]  ;;  %v1704_v61 = vld [vmem:[%s2364_s1 + $0x110] sm:$0xff]  ;;  %v1703_v0 = vld [vmem:[%s2364_s1 + $0x108] sm:$0xff] }
  0x15   :  { %536 = vmatpush.bf16.msra.mxu3 %v1697_v27  ;;  %v70_v60 = vld.sshfl [vmem:[#allocation1 + $0x30] sm:$0xff pattern:$0x73625140]  ;;  %v1711_v1 = vld [vmem:[%s2364_s1 + $0x148] sm:$0xff]  ;;  %v1702_v2 = vld [vmem:[%s2364_s1 + $0x100] sm:$0xff] }
  0x16   :  { %498 = vmatpush.bf16.msra.mxu0 %v1672_v23  ;;  %v1712_v62 = vld [vmem:[%s2364_s1 + $0x150] sm:$0xff]  ;;  %v84_v63 = vpack.c.bf16 %v70_v60, %v70_v60  ;;  %v1710_v3 = vld [vmem:[%s2364_s1 + $0x140] sm:$0xff]  ;;  %v69_v5 = vld.sshfl [vmem:[#allocation1 + $0x28] sm:$0xff pattern:$0x73625140] }
  0x17   :  { %511 = vmatpush.bf16.msra.mxu1 %v1680_v24  ;;  %v68_v4 = vld.sshfl [vmem:[#allocation1 + $0x20] sm:$0xff pattern:$0x73625140]  ;;  %v83_v7 = vpack.c.bf16 %v69_v5, %v69_v5  ;;  %v1472_v8 = vld [vmem:[%s2366_s3 + $0x70] sm:$0xf]  ;;  %v1743_v60 = vld [vmem:[%s2368_s5 + $0x38] sm:$0xff] }
  0x18   :  { %524 = vmatpush.bf16.msra.mxu2 %v1688_v30  ;;  %v82_v6 = vpack.c.bf16 %v68_v4, %v68_v4  ;;  %v1735_v9 = vld [vmem:[%s2366_s3 + $0x74] sm:$0xf0]  ;;  %v1734_v10 = vld [vmem:[%s2366_s3 + $0x74] sm:$0xf]  ;;  %v1474_v12 = vld [vmem:[%s2366_s3 + $0x78] sm:$0xf0] }
  0x19   :  { %537 = vmatpush.bf16.msra.mxu3 %v1696_v31  ;;  %v1473_v11 = vor.u32 %v1735_v9, %v1472_v8  ;;  %v1477_v13 = vor.u32 %v1734_v10, %v1474_v12  ;;  %v1464_v14 = vld [vmem:[%s2366_s3 + $0x60] sm:$0xf]  ;;  %v1733_v15 = vld [vmem:[%s2366_s3 + $0x64] sm:$0xf0]  ;;  %v1732_v16 = vld [vmem:[%s2366_s3 + $0x64] sm:$0xf] }
  0x1a   :  { %499 = vmatpush.bf16.msra.mxu0 %v1671_v32  ;;  %v1465_v17 = vor.u32 %v1733_v15, %v1464_v14  ;;  %v1466_v18 = vld [vmem:[%s2366_s3 + $0x68] sm:$0xf0]  ;;  %v1456_v20 = vld [vmem:[%s2366_s3 + $0x50] sm:$0xf]  ;;  %v1731_v21 = vld [vmem:[%s2366_s3 + $0x54] sm:$0xf0] }
  0x1b   :  { %512 = vmatpush.bf16.msra.mxu1 %v1679_v33  ;;  %v1469_v19 = vor.u32 %v1732_v16, %v1466_v18  ;;  %v1730_v22 = vld [vmem:[%s2366_s3 + $0x54] sm:$0xf]  ;;  %v1457_v23 = vor.u32 %v1731_v21, %v1456_v20  ;;  %v1458_v24 = vld [vmem:[%s2366_s3 + $0x58] sm:$0xf0]  ;;  %v1448_v26 = vld [vmem:[%s2366_s3 + $0x40] sm:$0xf] }
  0x1c   :  { %525 = vmatpush.bf16.msra.mxu2 %v1687_v34  ;;  %v1461_v25 = vor.u32 %v1730_v22, %v1458_v24  ;;  %v1729_v27 = vld [vmem:[%s2366_s3 + $0x44] sm:$0xf0]  ;;  %v1728_v28 = vld [vmem:[%s2366_s3 + $0x44] sm:$0xf]  ;;  %v1450_v30 = vld [vmem:[%s2366_s3 + $0x48] sm:$0xf0] }
  0x1d   :  { %538 = vmatpush.bf16.msra.mxu3 %v1695_v37  ;;  %v1449_v29 = vor.u32 %v1729_v27, %v1448_v26  ;;  %v1453_v31 = vor.u32 %v1728_v28, %v1450_v30  ;;  %v1440_v32 = vld [vmem:[%s2366_s3 + $0x30] sm:$0xf]  ;;  %v1727_v33 = vld [vmem:[%s2366_s3 + $0x34] sm:$0xf0]  ;;  %v1726_v34 = vld [vmem:[%s2366_s3 + $0x34] sm:$0xf] }
  0x1e   :  { %500 = vmatpush.bf16.msra.mxu0 %v1670_v35  ;;  %v1441_v35 = vor.u32 %v1727_v33, %v1440_v32  ;;  %v1432_v38 = vld [vmem:[%s2366_s3 + $0x20] sm:$0xf]  ;;  %v1725_v39 = vld [vmem:[%s2366_s3 + $0x24] sm:$0xf0]  ;;  %v1426_v48 = vld [vmem:[%s2366_s3 + $0x18] sm:$0xf0] }
  0x1f   :  { %513 = vmatpush.bf16.msra.mxu1 %v1678_v36  ;;  %v1442_v36 = vld [vmem:[%s2366_s3 + $0x38] sm:$0xf0]  ;;  %v1749_v4 = vld [vmem:[%s2368_s5 + $0x68] sm:$0xff]  ;;  %v1740_v8 = vld [vmem:[%s2368_s5 + $0x20] sm:$0xff] }
  0x20   :  { %526 = vmatpush.bf16.msra.mxu2 %v1686_v42  ;;  %v1445_v37 = vor.u32 %v1726_v34, %v1442_v36  ;;  %v1434_v42 = vld [vmem:[%s2366_s3 + $0x28] sm:$0xf0]  ;;  %v1748_v9 = vld [vmem:[%s2368_s5 + $0x60] sm:$0xff]  ;;  %v1747_v12 = vld [vmem:[%s2368_s5 + $0x58] sm:$0xff] }
  0x21   :  { %501 = vmatmul.bf16.vlgmr.msra.gmra.mxu0 %v78_v44  ;;  %539 = vmatpush.bf16.msra.mxu3 %v1694_v46  ;;  %v1424_v44 = vld [vmem:[%s2366_s3 + $0x10] sm:$0xf]  ;;  %v1722_v46 = vld [vmem:[%s2366_s3 + $0x14] sm:$0xf]  ;;  %v1737_v28 = vld [vmem:[%s2368_s5 + $0x8] sm:$0xff] }
  0x22   :  { %545 = vmatpush.bf16.msrb.mxu0 %v1709_v40  ;;  %514 = vmatmul.bf16.vlgmr.msra.gmra.mxu1 %v79_v45  ;;  %v1724_v40 = vld [vmem:[%s2366_s3 + $0x24] sm:$0xf]  ;;  %v1723_v45 = vld [vmem:[%s2366_s3 + $0x14] sm:$0xf0]  ;;  %v1738_v15 = vld [vmem:[%s2368_s5 + $0x10] sm:$0xff] }
  0x23   :  { %558 = vmatpush.bf16.msrb.mxu1 %v1717_v41  ;;  %527 = vmatmul.bf16.vlgmr.msra.gmra.mxu2 %v80_v51  ;;  %v1433_v41 = vor.u32 %v1725_v39, %v1432_v38  ;;  %v1437_v43 = vor.u32 %v1724_v40, %v1434_v42  ;;  %v1429_v51 = vor.u32 %v1722_v46, %v1426_v48  ;;  %v1746_v16 = vld [vmem:[%s2368_s5 + $0x50] sm:$0xff]  ;;  %v1736_v30 = vld [vmem:[%s2368_s5] sm:$0xff]  ;;  %v1783_v38 = vld [vmem:[%s2370_s7 + $0xf4] sm:$0xf0] }
  0x24   :  { %577 = vmatpush.bf16.msrb.mxu2 %v1719_v47  ;;  %540 = vmatmul.bf16.vlgmr.msra.gmra.mxu3 %v81_v52  ;;  %v1425_v47 = vor.u32 %v1723_v45, %v1424_v44  ;;  %v1416_v52 = vld [vmem:[%s2366_s3] sm:$0xf]  ;;  %v1782_v33 = vld [vmem:[%s2370_s7 + $0xec] sm:$0xf0]  ;;  %v1780_v34 = vld [vmem:[%s2370_s7 + $0xe4] sm:$0xf] }
  0x25   :  { %688 = vmatpush.bf16.msrb.mxu3 %v1473_v11  ;;  %v1739_v11 = vld [vmem:[%s2368_s5 + $0x18] sm:$0xff]  ;;  %v1656_v32 = vld [vmem:[%s2370_s7 + $0xe0] sm:$0xf]  ;;  %v1658_v36 = vld [vmem:[%s2370_s7 + $0xf0] sm:$0xf0] }
  0x26   :  { %546 = vmatpush.bf16.msrb.mxu0 %v1708_v49  ;;  %v1661_v39 = vor.u32 %v1780_v34, %v1658_v36  ;;  %v1666_v42 = vld [vmem:[%s2370_s7 + $0xf8] sm:$0xf0]  ;;  %v1778_v45 = vld [vmem:[%s2370_s7 + $0xcc] sm:$0xf0]  ;;  %v1776_v46 = vld [vmem:[%s2370_s7 + $0xc4] sm:$0xf] }
  0x27   :  { %559 = vmatpush.bf16.msrb.mxu1 %v1716_v50  ;;  %v602_v34 = vld [vmem:[%s2367_s4] sm:$0x3]  ;;  %v1586_v36 = vld [vmem:[%s2370_s7 + $0x58] sm:$0xf0]  ;;  %vm1167_vm8 = vmor %vm1166_vm6, %vm1165_vm5 }
  0x28   :  { %578 = vmatpush.bf16.msrb.mxu2 %v1718_v53  ;;  %v1721_v53 = vld [vmem:[%s2366_s3 + $0x4] sm:$0xf0] }
  0x29   :  { %689 = vmatpush.bf16.msrb.mxu3 %v1465_v17 }
  0x2a   :  { %547 = vmatpush.bf16.msrb.mxu0 %v1707_v54  ;;  %v1720_v54 = vld [vmem:[%s2366_s3 + $0x4] sm:$0xf] }
  0x2b   :  { %560 = vmatpush.bf16.msrb.mxu1 %v1715_v55  ;;  %v1417_v55 = vor.u32 %v1721_v53, %v1416_v52  ;;  %v1777_v52 = vld [vmem:[%s2370_s7 + $0xcc] sm:$0xf] }
  0x2c   :  { %701 = vmatpush.bf16.msra.mxu2 %v1477_v13 }
  0x2d   :  { %690 = vmatpush.bf16.msrb.mxu3 %v1457_v23 }
  0x2e   :  { %548 = vmatpush.bf16.msrb.mxu0 %v1706_v56  ;;  %v1418_v56 = vld [vmem:[%s2366_s3 + $0x8] sm:$0xf0] }
  0x2f   :  { %561 = vmatpush.bf16.msrb.mxu1 %v1714_v57  ;;  %v1421_v57 = vor.u32 %v1720_v54, %v1418_v56  ;;  %v1650_v54 = vld [vmem:[%s2370_s7 + $0xd8] sm:$0xf0]  ;;  %v1774_v56 = vld [vmem:[%s2370_s7 + $0xac] sm:$0xf0] }
  0x30   :  { %702 = vmatpush.bf16.msra.mxu2 %v1469_v19 }
  0x31   :  { %691 = vmatpush.bf16.msrb.mxu3 %v1449_v29  ;;  %v1745_v29 = vld [vmem:[%s2368_s5 + $0x48] sm:$0xff] }
  0x32   :  { %549 = vmatpush.bf16.msrb.mxu0 %v1705_v58 }
  0x33   :  { %562 = vmatpush.bf16.msrb.mxu1 %v1713_v59  ;;  %1413 = vmatmul.msk.bf16.vlgmr.msrb.gmra.mxu2 %vm489_vm0, %v84_v63 }
  0x34   :  { %703 = vmatpush.bf16.msra.mxu2 %v1461_v25 }
  0x35   :  { %692 = vmatpush.bf16.msrb.mxu3 %v1441_v35  ;;  %v1657_v35 = vor.u32 %v1782_v33, %v1656_v32  ;;  %v1584_v32 = vld [vmem:[%s2370_s7 + $0x48] sm:$0xf]  ;;  %v1763_v33 = vld [vmem:[%s2370_s7 + $0x54] sm:$0xf0] }
  0x36   :  { %550 = vmatpush.bf16.msrb.mxu0 %v1704_v61  ;;  %v1751_v61 = vld [vmem:[%s2368_s5 + $0x78] sm:$0xff] }
  0x37   :  { %563 = vmatpush.bf16.msrb.mxu1 %v1712_v62 }
  0x38   :  { %704 = vmatpush.bf16.msra.mxu2 %v1453_v31  ;;  %v1744_v31 = vld [vmem:[%s2368_s5 + $0x40] sm:$0xff] }
  0x39   :  { %693 = vmatpush.bf16.msrb.mxu3 %v1433_v41  ;;  %v1781_v41 = vld [vmem:[%s2370_s7 + $0xec] sm:$0xf] }
  0x3a   :  { %551 = vmatpush.bf16.msrb.mxu0 %v1703_v0  ;;  %v1742_v0 = vld [vmem:[%s2368_s5 + $0x30] sm:$0xff]  ;;  %v1669_v44 = vor.u32 %v1781_v41, %v1666_v42  ;;  %v605_v41 = vperm.slane %v602_v34, 1 }
  0x3b   :  { %564 = vmatpush.bf16.msrb.mxu1 %v1711_v1  ;;  %v1750_v1 = vld [vmem:[%s2368_s5 + $0x70] sm:$0xff] }
  0x3c   :  { %705 = vmatpush.bf16.msra.mxu2 %v1445_v37  ;;  %v1664_v37 = vld [vmem:[%s2370_s7 + $0xe8] sm:$0xf] }
  0x3d   :  { %694 = vmatpush.bf16.msrb.mxu3 %v1425_v47  ;;  %v1665_v40 = vor.u32 %v1783_v38, %v1664_v37  ;;  %v1642_v47 = vld [vmem:[%s2370_s7 + $0xd0] sm:$0xf0] }
  0x3e   :  { %552 = vmatpush.bf16.msrb.mxu0 %v1702_v2  ;;  %v1784_v2 = vld [vmem:[%s2365_s2] ss:$0 sm:$0xff] }
  0x3f   :  { %565 = vmatpush.bf16.msrb.mxu1 %v1710_v3  ;;  %v1741_v3 = vld [vmem:[%s2368_s5 + $0x28] sm:$0xff] }
  0x40   :  { %706 = vmatpush.bf16.msra.mxu2 %v1437_v43  ;;  %v1640_v43 = vld [vmem:[%s2370_s7 + $0xc0] sm:$0xf] }
  0x41   :  { %553 = vmatmul.bf16.vlgmr.msrb.gmra.mxu0 %v82_v6  ;;  %695 = vmatpush.bf16.msrb.mxu3 %v1417_v55  ;;  %v1641_v48 = vor.u32 %v1778_v45, %v1640_v43  ;;  %v1624_v55 = vld [vmem:[%s2370_s7 + $0xa0] sm:$0xf] }
  0x42   :  { %566 = vmatmul.bf16.vlgmr.msrb.gmra.mxu1 %v83_v7  ;;  %850 = vmatpush.bf16.msra.mxu0 %v1743_v60  ;;  %v1632_v60 = vld [vmem:[%s2370_s7 + $0xa8] sm:$0xf] }
  0x43   :  { %863 = vmatpush.bf16.msra.mxu1 %v1751_v61  ;;  %v1625_v61 = vor.u32 %v1774_v56, %v1624_v55  ;;  %v1756_v55 = vld [vmem:[%s2370_s7 + $0x24] sm:$0xf] }
  0x44   :  { %707 = vmatpush.bf16.msra.mxu2 %v1429_v51  ;;  %v1779_v51 = vld [vmem:[%s2370_s7 + $0xd4] sm:$0xf0] }
  0x45   :  { %1080 = vmatpush.bf16.msra.mxu3 %v1657_v35  ;;  %v1761_v35 = vld [vmem:[%s2370_s7 + $0x4c] sm:$0xf] }
  0x46   :  { %851 = vmatpush.bf16.msra.mxu0 %v1742_v0  ;;  %v1634_v0 = vld [vmem:[%s2370_s7 + $0xb8] sm:$0xf0]  ;;  %v1589_v42 = vor.u32 %v1761_v35, %v1586_v36 }
  0x47   :  { %864 = vmatpush.bf16.msra.mxu1 %v1750_v1 }
  0x48   :  { %708 = vmatpush.bf16.msra.mxu2 %v1421_v57  ;;  %v1653_v57 = vor.u32 %v1777_v52, %v1650_v54  ;;  %v1758_v54 = vld [vmem:[%s2370_s7 + $0x2c] sm:$0xf0] }
  0x49   :  { %1081 = vmatpush.bf16.msra.mxu3 %v1641_v48 }
  0x4a   :  { %852 = vmatpush.bf16.msra.mxu0 %v1741_v3  ;;  %v1608_v3 = vld [vmem:[%s2370_s7 + $0x80] sm:$0xf] }
  0x4b   :  { %865 = vmatpush.bf16.msra.mxu1 %v1749_v4  ;;  %v1770_v4 = vld [vmem:[%s2370_s7 + $0x8c] sm:$0xf0] }
  0x4c   :  { %1093 = vmatpush.bf16.msrb.mxu2 %v1661_v39  ;;  %v1585_v39 = vor.u32 %v1763_v33, %v1584_v32 }
  0x4d   :  { %1082 = vmatpush.bf16.msra.mxu3 %v1625_v61 }
  0x4e   :  { %853 = vmatpush.bf16.msra.mxu0 %v1740_v8  ;;  %v1616_v8 = vld [vmem:[%s2370_s7 + $0x88] sm:$0xf] }
  0x4f   :  { %866 = vmatpush.bf16.msra.mxu1 %v1748_v9  ;;  %v1771_v9 = vld [vmem:[%s2370_s7 + $0x94] sm:$0xf0] }
  0x52   :  { %854 = vmatpush.bf16.msra.mxu0 %v1739_v11  ;;  %v1618_v11 = vld [vmem:[%s2370_s7 + $0x98] sm:$0xf0] }
  0x53   :  { %867 = vmatpush.bf16.msra.mxu1 %v1747_v12  ;;  %v1609_v12 = vor.u32 %v1770_v4, %v1608_v3  ;;  %v1752_v3 = vld [vmem:[%s2370_s7 + $0x4] sm:$0xf] }
  0x55   :  { %1083 = vmatpush.bf16.msra.mxu3 %v1609_v12 }
  0x56   :  { %855 = vmatpush.bf16.msra.mxu0 %v1738_v15  ;;  %v1592_v15 = vld [vmem:[%s2370_s7 + $0x60] sm:$0xf] }
  0x57   :  { %868 = vmatpush.bf16.msra.mxu1 %v1746_v16  ;;  %v1766_v16 = vld [vmem:[%s2370_s7 + $0x6c] sm:$0xf0] }
  0x5a   :  { %856 = vmatpush.bf16.msra.mxu0 %v1737_v28  ;;  %v1762_v28 = vld [vmem:[%s2370_s7 + $0x4c] sm:$0xf0] }
  0x5b   :  { %869 = vmatpush.bf16.msra.mxu1 %v1745_v29  ;;  %v1760_v29 = vld [vmem:[%s2370_s7 + $0x44] sm:$0xf] }
  0x5e   :  { %857 = vmatpush.bf16.msra.mxu0 %v1736_v30 }
  0x5f   :  { %870 = vmatpush.bf16.msra.mxu1 %v1744_v31  ;;  %v1578_v31 = vld [vmem:[%s2370_s7 + $0x50] sm:$0xf0] }
  0x60   :  { %v1581_v38 = vor.u32 %v1760_v29, %v1578_v31 }
  0x62   :  { %1106 = vmatpush.bf16.msrb.mxu0 %v1665_v40  ;;  %v604_v40 = vperm.slane %v602_v34, 0 }
  0x63   :  { %1119 = vmatpush.bf16.msrb.mxu1 %v1669_v44 }
  0x67   :  { %1120 = vmatpush.bf16.msrb.mxu1 %v1653_v57  ;;  %v1562_v57 = vld [vmem:[%s2370_s7 + $0x30] sm:$0xf0] }
  0x9e   :  { %v502_v49 = vpop.f32.mrf.mxu0 }
  0x9f   :  { %v515_v50 = vpop.f32.mrf.mxu1  ;;  %v503_v5 = vadd.f32 %v1784_v2, %v502_v49  ;;  %v1645_v49 = vor.u32 %v1776_v46, %v1642_v47 }
  0xa1   :  { %v516_v10 = vadd.f32 %v515_v50, %v503_v5  ;;  %v1648_v50 = vld [vmem:[%s2370_s7 + $0xc8] sm:$0xf]  ;;  %1094 = vmatpush.bf16.msrb.mxu2 %v1645_v49  ;;  %v1768_v5 = vld [vmem:[%s2370_s7 + $0x84] sm:$0xf] }
  0xa2   :  { %v1649_v53 = vor.u32 %v1779_v51, %v1648_v50 }
  0xa4   :  { %1107 = vmatpush.bf16.msrb.mxu0 %v1649_v53  ;;  %v1560_v53 = vld [vmem:[%s2370_s7 + $0x20] sm:$0xf] }
  0xa5   :  { %v1561_v56 = vor.u32 %v1758_v54, %v1560_v53 }
  0xa6   :  { %v504_v58 = vpop.f32.mrf.mxu0  ;;  %v528_v62 = vpop.f32.mrf.mxu2 }
  0xa7   :  { %v517_v59 = vpop.f32.mrf.mxu1  ;;  %v541_v63 = vpop.f32.mrf.mxu3  ;;  %v529_v13 = vadd.f32 %v528_v62, %v516_v10  ;;  %v1772_v58 = vld [vmem:[%s2370_s7 + $0xa4] sm:$0xf]  ;;  %v1775_v62 = vld [vmem:[%s2370_s7 + $0xb4] sm:$0xf0]  ;;  %v1769_v10 = vld [vmem:[%s2370_s7 + $0x8c] sm:$0xf] }
  0xa8   :  { %v1626_v59 = vld [vmem:[%s2370_s7 + $0xb0] sm:$0xf0]  ;;  %v1633_v2 = vor.u32 %v1775_v62, %v1632_v60  ;;  %v1565_v60 = vor.u32 %v1756_v55, %v1562_v57  ;;  %v1757_v62 = vld [vmem:[%s2370_s7 + $0x2c] sm:$0xf] }
  0xa9   :  { %v542_v17 = vadd.f32 %v541_v63, %v529_v13  ;;  %v1773_v63 = vld [vmem:[%s2370_s7 + $0xac] sm:$0xf]  ;;  %v1629_v1 = vor.u32 %v1772_v58, %v1626_v59  ;;  %v1568_v58 = vld [vmem:[%s2370_s7 + $0x28] sm:$0xf]  ;;  %v1759_v59 = vld [vmem:[%s2370_s7 + $0x34] sm:$0xf0] }
  0xaa   :  { %1108 = vmatpush.bf16.msrb.mxu0 %v1633_v2  ;;  %v1569_v61 = vor.u32 %v1759_v59, %v1568_v58  ;;  %v1754_v2 = vld [vmem:[%s2370_s7 + $0xc] sm:$0xf0] }
  0xab   :  { %1095 = vmatpush.bf16.msrb.mxu2 %v1629_v1  ;;  %v1544_v1 = vld [vmem:[%s2370_s7] sm:$0xf] }
  0xac   :  { %v1545_v4 = vor.u32 %v1754_v2, %v1544_v1 }
  0xae   :  { %v530_v6 = vpop.f32.mrf.mxu2 }
  0xaf   :  { %v543_v7 = vpop.f32.mrf.mxu3  ;;  %v1637_v6 = vor.u32 %v1773_v63, %v1634_v0  ;;  %v1570_v63 = vld [vmem:[%s2370_s7 + $0x38] sm:$0xf0] }
  0xb0   :  { %v1610_v7 = vld [vmem:[%s2370_s7 + $0x90] sm:$0xf0]  ;;  %v1573_v0 = vor.u32 %v1757_v62, %v1570_v63 }
  0xb1   :  { %v1613_v13 = vor.u32 %v1768_v5, %v1610_v7  ;;  %1121 = vmatpush.bf16.msrb.mxu1 %v1637_v6  ;;  %v1546_v5 = vld [vmem:[%s2370_s7 + $0x10] sm:$0xf0]  ;;  %v1552_v6 = vld [vmem:[%s2370_s7 + $0x8] sm:$0xf]  ;;  %v1755_v7 = vld [vmem:[%s2370_s7 + $0x14] sm:$0xf0] }
  0xb3   :  { %1096 = vmatpush.bf16.msrb.mxu2 %v1613_v13  ;;  %v1785_v13 = vld [vmem:[%s2369_s6] ss:$0 sm:$0xff] }
  0xb6   :  { %v580_v14 = vpop.f32.mrf.mxu2 }
  0xbe   :  { %v554_v18 = vpop.f32.mrf.mxu0  ;;  %v582_v22 = vpop.f32.mrf.mxu2 }
  0xbf   :  { %v567_v19 = vpop.f32.mrf.mxu1  ;;  %v555_v20 = vadd.f32 %v554_v18, %v542_v17  ;;  %v1764_v17 = vld [vmem:[%s2370_s7 + $0x64] sm:$0xf]  ;;  %v1621_v18 = vor.u32 %v1769_v10, %v1618_v11  ;;  %v1765_v22 = vld [vmem:[%s2370_s7 + $0x6c] sm:$0xf]  ;;  %v1554_v11 = vld [vmem:[%s2370_s7 + $0x18] sm:$0xf0] }
  0xc0   :  { %v1753_v10 = vld [vmem:[%s2370_s7 + $0xc] sm:$0xf] }
  0xc1   :  { %v568_v21 = vadd.f32 %v567_v19, %v555_v20  ;;  %v1594_v19 = vld [vmem:[%s2370_s7 + $0x70] sm:$0xf0]  ;;  %v1600_v20 = vld [vmem:[%s2370_s7 + $0x68] sm:$0xf]  ;;  %1122 = vmatpush.bf16.msrb.mxu1 %v1621_v18  ;;  %v1557_v12 = vor.u32 %v1753_v10, %v1554_v11 }
  0xc3   :  { %v581_v23 = vadd.f32 %v580_v14, %v568_v21  ;;  %v1617_v14 = vor.u32 %v1771_v9, %v1616_v8  ;;  %v1767_v21 = vld [vmem:[%s2370_s7 + $0x74] sm:$0xf0]  ;;  %v1549_v8 = vor.u32 %v1752_v3, %v1546_v5  ;;  %v1553_v9 = vor.u32 %v1755_v7, %v1552_v6 }
  0xc5   :  { %v584_v24 = vmax.f32 %v581_v23, 0.0  ;;  %v1602_v23 = vld [vmem:[%s2370_s7 + $0x78] sm:$0xf0]  ;;  %1109 = vmatpush.bf16.msrb.mxu0 %v1617_v14 }
  0xc6   :  { %v556_v25 = vpop.f32.mrf.mxu0  ;;  %v1605_v30 = vor.u32 %v1765_v22, %v1602_v23  ;;  %v910_v22 = vld [vmem:[%s2371_s8] sm:$0xf] }
  0xc7   :  { %v569_v26 = vpop.f32.mrf.mxu1  ;;  %v585_v27 = vpack.c.bf16 %v584_v24, %v584_v24  ;;  %v1593_v24 = vor.u32 %v1766_v16, %v1592_v15  ;;  %v1597_v25 = vor.u32 %v1764_v17, %v1594_v19  ;;  %v914_v23 = vperm.slane %v910_v22, 2 }
  0xc8   :  { %v1601_v26 = vor.u32 %v1767_v21, %v1600_v20  ;;  %1123 = vmatpush.bf16.msrb.mxu1 %v1605_v30  ;;  %v913_v29 = vperm.slane %v910_v22, 1  ;;  %v912_v30 = vperm.slane %v910_v22, 0 }
  0xc9   :  { %696 = vmatmul.bf16.vlgmr.msrb.gmra.mxu3 %v585_v27  ;;  %709 = vmatmul.bf16.vlgmr.msra.gmra.mxu2 %v585_v27  ;;  %v1576_v27 = vld [vmem:[%s2370_s7 + $0x40] sm:$0xf] }
  0xca   :  { %1084 = vmatpush.bf16.msra.mxu3 %v1593_v24  ;;  %v1577_v37 = vor.u32 %v1762_v28, %v1576_v27  ;;  %1097 = vmatpush.bf16.msrb.mxu2 %v1597_v25  ;;  %v915_v24 = vperm.slane %v910_v22, 3 }
  0xcb   :  { %1110 = vmatpush.bf16.msrb.mxu0 %v1601_v26 }
  0xcc   :  { %1124 = vmatpush.bf16.msrb.mxu1 %v1589_v42 }
  0xce   :  { %1085 = vmatpush.bf16.msra.mxu3 %v1577_v37  ;;  %1098 = vmatpush.bf16.msrb.mxu2 %v1581_v38 }
  0xcf   :  { %1111 = vmatpush.bf16.msrb.mxu0 %v1585_v39 }
  0xd0   :  { %1125 = vmatpush.bf16.msrb.mxu1 %v1573_v0 }
  0xd2   :  { %1086 = vmatpush.bf16.msra.mxu3 %v1561_v56  ;;  %1099 = vmatpush.bf16.msrb.mxu2 %v1565_v60 }
  0xd3   :  { %1112 = vmatpush.bf16.msrb.mxu0 %v1569_v61 }
  0xd4   :  { %1126 = vmatpush.bf16.msrb.mxu1 %v1557_v12 }
  0xd6   :  { %1087 = vmatpush.bf16.msra.mxu3 %v1545_v4  ;;  %1100 = vmatpush.bf16.msrb.mxu2 %v1549_v8 }
  0xd7   :  { %1113 = vmatpush.bf16.msrb.mxu0 %v1553_v9 }
 0x14c   :  { %v697_v43 = vpop.f32.mrf.mxu3  ;;  %v710_v44 = vpop.f32.mrf.mxu2 }
 0x14d   :  { %v698_v45 = vadd.f32 %v697_v43, %v604_v40  ;;  %v711_v46 = vadd.f32 %v710_v44, %v605_v41 }
 0x14f   :  { %v714_v47 = vmax.f32 %v698_v45, 0.0  ;;  %v715_v48 = vmax.f32 %v711_v46, 0.0 }
 0x151   :  { %v716_v49 = vpack.c.bf16 %v714_v47, %v714_v47  ;;  %v717_v50 = vpack.c.bf16 %v715_v48, %v715_v48 }
 0x153   :  { %858 = vmatmul.bf16.vlgmr.msra.gmra.mxu0 %v716_v49  ;;  %871 = vmatmul.bf16.vlgmr.msra.gmra.mxu1 %v717_v50 }
 0x154   :  { %v699_v51 = vpop.f32.mrf.mxu3  ;;  %v712_v52 = vpop.f32.mrf.mxu2 }
 0x1d0   :  { %v859_v14 = vpop.f32.mrf.mxu0  ;;  %v872_v15 = vpop.f32.mrf.mxu1 }
 0x1d1   :  { %v860_v16 = vadd.f32 %v1785_v13, %v859_v14 }
 0x1d3   :  { %v873_v17 = vadd.f32 %v872_v15, %v860_v16 }
 0x1d5   :  { %v876_v18 = vmax.f32 %v873_v17, 0.0 }
 0x1d7   :  { %v877_v19 = vpack.c.bf16 %v876_v18, %v876_v18 }
 0x1d8   :  { %v861_v20 = vpop.f32.mrf.mxu0  ;;  %v874_v21 = vpop.f32.mrf.mxu1 }
 0x1d9   :  { %1088 = vmatmul.bf16.vlgmr.msra.gmra.mxu3 %v877_v19  ;;  %1101 = vmatmul.bf16.vlgmr.msrb.gmra.mxu2 %v877_v19 }
 0x1da   :  { %1114 = vmatmul.bf16.vlgmr.msrb.gmra.mxu0 %v877_v19  ;;  %1127 = vmatmul.bf16.vlgmr.msrb.gmra.mxu1 %v877_v19 }
 0x257   :  { %v1115_v25 = vpop.f32.mrf.mxu0  ;;  %v1128_v26 = vpop.f32.mrf.mxu1 }
 0x258   :  { %v1116_v27 = vadd.f32 %v1115_v25, %v914_v23  ;;  %v1129_v28 = vadd.f32 %v1128_v26, %v915_v24 }
 0x25a   :  { %v1137_v31 = vrot.slane %v1116_v27, 4  ;;  %v1138_v32 = vrot.slane %v1129_v28, 2 }
 0x25c   :  { %v1089_v33 = vpop.f32.mrf.mxu3  ;;  %v1102_v34 = vpop.f32.mrf.mxu2  ;;  %v1142_v40 = vsel %vm1141_vm4, %v1137_v31, %v1138_v32 }
 0x25d   :  { %v1103_v35 = vadd.f32 %v1102_v34, %v913_v29  ;;  %v1090_v36 = vadd.f32 %v1089_v33, %v912_v30 }
 0x25f   :  { %v1136_v37 = vrot.slane %v1103_v35, 6  ;;  %v1117_v38 = vpop.f32.mrf.mxu0  ;;  %v1130_v39 = vpop.f32.mrf.mxu1 }
 0x261   :  { %v1140_v41 = vsel %vm1139_vm1, %v1090_v36, %v1136_v37 }
 0x262   :  { %v1144_v42 = vsel %vm1143_vm7, %v1140_v41, %v1142_v40 }
 0x263   :  { %1168 = vst.msk [vmem:[#allocation2] sm:$0xff] %vm1167_vm8, %v1144_v42 }
 0x264   :  { %v1091_v43 = vpop.f32.mrf.mxu3  ;;  %v1104_v44 = vpop.f32.mrf.mxu2 }
 0x26a   :  { %v1202_v45 = vld [vmem:[#allocation2] sm:$0xff] }
 0x26b   :  { %1203 = vst [vmem:[%s2372_s9] sm:$0xff] %v1202_v45 }

</bundles_post_ra>
